<compile_context>
chip_gen: v6e
topology: v6e:2x2x1
jax: 0.10.0
libtpu: 0.0.40
codegen_flags: <defaults>
</compile_context>

<pallas_src>
import functools

import jax
import jax.numpy as jnp
from jax import lax
from jax.experimental import pallas as pl
from jax.experimental.pallas import tpu as pltpu


def _tv_partial_kernel(x_ref, out_ref, *, h):
    """One grid step: TV partial sum over a block of whole image planes.

    x_ref: (tp*h, w) block of the (B*C*H, W)-flattened input (native dtype).
    out_ref: (1, 8, 128) f32 tile holding the broadcast block partial.
    """
    th, w = x_ref.shape
    f32 = jnp.float32

    # Single load + single upcast; shifted operands via XLU rotations.
    xb = x_ref[...].astype(f32)                              # (th, w)
    dv = jnp.abs(xb - pltpu.roll(xb, shift=1, axis=0))       # x[r]   - x[r-1]
    dh = jnp.abs(xb - pltpu.roll(xb, shift=1, axis=1))       # x[:,c] - x[:,c-1]

    # Horizontal wrap column (lane 0) is invalid: kill it with a (1,w) lane
    # mask before the lane-first reduce.
    lane_ok = lax.broadcasted_iota(jnp.int32, (1, w), 1) > 0
    col_h = jnp.sum(jnp.where(lane_ok, dh, 0.0), axis=1, keepdims=True)  # (th,1)

    # Lane-first reduce the vertical diffs, then mask seam/wrap rows
    # (local_row % h == 0) on the tiny reduced column instead of per element.
    col_v = jnp.sum(dv, axis=1, keepdims=True)                           # (th,1)
    row_ok = (lax.broadcasted_iota(jnp.int32, (th, 1), 0) % h) != 0
    partial = jnp.sum(jnp.where(row_ok, col_v, 0.0) + col_h)

    # Lane-dense store: broadcast the block partial over the full (1,8,128)
    # tile (single unmasked full-width store).  The wrapper reads [i, 0, 0].
    out_ref[...] = jnp.full(out_ref.shape, partial, dtype=f32)


def _planes_per_block(num_planes: int, h: int, w: int, itemsize: int,
                      budget_bytes: int) -> int:
    """Image planes per grid step.

    Constraints: tp divides num_planes (blocks stay plane-aligned) and
    tp*h % 8 == 0 (sublane rule) unless the block covers the whole first dim.
    Budget counts the real per-block VMEM footprint (double-buffered input DMA
    + ~4 block-sized f32 kernel temporaries).  Prefers >=2 (ideally an even
    number of) grid steps so v7x's two TensorCores both get work.
    """
    lanes = pl.cdiv(w, 128) * 128                    # VMEM lane padding
    per_plane = h * lanes * (2 * itemsize + 4 * 4)   # 2x DMA bufs + ~4 f32 temps
    tp_cap = max(1, min(num_planes, budget_bytes // per_plane))
    if num_planes >= 2:
        tp_cap = min(tp_cap, max(1, num_planes // 2))  # guarantee >=2 grid steps

    first_valid = None
    for tp in range(tp_cap, 0, -1):
        if num_planes % tp != 0 or (tp * h) % 8 != 0:
            continue
        if first_valid is None:
            first_valid = tp
        if (num_planes // tp) % 2 == 0:              # even block count preferred
            return tp
    if first_valid is not None:
        return first_valid
    # No sublane-aligned divisor fits: fall back to one full-first-dim block
    # (block == full dim is exempt from the multiple-of-8 sublane rule).
    # TODO(synk): halo-style H tiling for very large single planes.
    return num_planes


def tv_loss(x, weight: float = 1.0, *, block_budget_bytes: int = 24 * 1024 * 1024):
    """Pallas TPU implementation of TVLoss.forward.

    Args:
      x: (B, C, H, W) array (any float dtype; upcast to f32 inside the kernel).
      weight: TV loss weight.
      block_budget_bytes: approximate per-block VMEM footprint budget.

    Returns:
      scalar float32 loss.
    """
    b, c, h, w = x.shape
    assert h >= 2 and w >= 2, "TV loss needs at least 2 rows and 2 columns"
    bc = b * c

    tp = _planes_per_block(bc, h, w, x.dtype.itemsize, block_budget_bytes)
    th = tp * h
    num_blocks = bc // tp

    # Flatten to (B*C*H, W); vertical diffs are computed on this 2-D layout
    # with plane seams masked inside the kernel.
    x2d = x.reshape(bc * h, w)

    kernel = functools.partial(_tv_partial_kernel, h=h)

    partials = pl.pallas_call(
        kernel,
        out_shape=jax.ShapeDtypeStruct((num_blocks, 8, 128), jnp.float32),
        grid=(num_blocks,),
        in_specs=[pl.BlockSpec((th, w), lambda i: (i, 0))],
        out_specs=pl.BlockSpec((1, 8, 128), lambda i: (i, 0, 0)),
        compiler_params=pltpu.CompilerParams(
            dimension_semantics=("parallel",),
            vmem_limit_bytes=48 * 1024 * 1024,
        ),
        cost_estimate=pl.CostEstimate(
            flops=int(6 * x.size),            # 2 sub + 2 abs + ~2 reduce adds / elem
            transcendentals=0,
            bytes_accessed=int(x.size * x.dtype.itemsize
                               + num_blocks * 8 * 128 * 4),
        ),
    )(x2d)

    scale = jnp.float32(float(weight) / float(c * h * w))
    return jnp.sum(partials[:, 0, 0]) * scale


def tv_loss_ref(x, weight: float = 1.0):
    b, c, h, w = x.shape
    xf = x.astype(jnp.float32)
    tv_h = jnp.sum(jnp.abs(xf[:, :, 1:, :] - xf[:, :, :-1, :]))
    tv_w = jnp.sum(jnp.abs(xf[:, :, :, 1:] - xf[:, :, :, :-1]))
    return weight * (tv_h + tv_w) / (c * h * w)


if __name__ == "__main__":
    key = jax.random.PRNGKey(0)
    # Small NCHW input consistent with the module's forward.
    x = jax.random.normal(key, (2, 4, 16, 16), dtype=jnp.float32)
    weight = 1.0

    ref = jax.block_until_ready(tv_loss_ref(x, weight))

    # Default path: 2 blocks of 4 planes each for this shape (even block count
    # -> both v7x TensorCores usable).
    out = jax.block_until_ready(tv_loss(x, weight))
    assert jnp.allclose(out, ref, rtol=1e-5, atol=1e-5), (out, ref)

    # Force a tiny budget so the 1-D "parallel" grid has many steps and the
    # per-block partials + in-kernel seam masking are exercised harder.
    out_small = jax.block_until_ready(
        tv_loss(x, weight, block_budget_bytes=64 * 1024))
    assert jnp.allclose(out_small, ref, rtol=1e-5, atol=1e-5), (out_small, ref)

    # Non-trivial weight.
    ref_w = jax.block_until_ready(tv_loss_ref(x, 2.5))
    out_w = jax.block_until_ready(tv_loss(x, 2.5))
    assert jnp.allclose(out_w, ref_w, rtol=1e-5, atol=1e-5), (out_w, ref_w)

    print("KERNEL_OK")
</pallas_src>

<mosaic_0001>
module attributes {stable_mosaic.version = 11 : i64} {
  func.func @_tv_partial_kernel(%arg0: i32, %arg1: memref<64x16xf32, #tpu.memory_space<vmem>>, %arg2: memref<1x8x128xf32, #tpu.memory_space<vmem>>) attributes {dimension_semantics = [#tpu.dimension_semantics<parallel>], iteration_bounds = array<i64: 2>, scalar_prefetch = 0 : i64, scratch_operands = 0 : i64, tpu.core_type = #tpu.core_type<tc>, window_params = [{transform_indices = @transform_0, window_bounds = array<i64: 64, 16>}, {transform_indices = @transform_1, window_bounds = array<i64: 1, 8, 128>}]} {
    %c0 = arith.constant 0 : index
    %c0_0 = arith.constant 0 : index
    %0 = vector.load %arg1[%c0, %c0_0] : memref<64x16xf32, #tpu.memory_space<vmem>>, vector<64x16xf32>
    %c1_i32 = arith.constant 1 : i32
    %1 = tpu.dynamic_rotate %0 by %c1_i32 dim 0 : vector<64x16xf32>, i32 -> vector<64x16xf32>
    %2 = arith.subf %0, %1 : vector<64x16xf32>
    %3 = math.absf %2 : vector<64x16xf32>
    %c1_i32_1 = arith.constant 1 : i32
    %4 = tpu.dynamic_rotate %0 by %c1_i32_1 dim 1 : vector<64x16xf32>, i32 -> vector<64x16xf32>
    %5 = arith.subf %0, %4 : vector<64x16xf32>
    %6 = math.absf %5 : vector<64x16xf32>
    %7 = tpu.iota {dimensions = array<i32: 1>} : vector<1x16xi32>
    %c0_i32 = arith.constant 0 : i32
    %8 = vector.broadcast %c0_i32 : i32 to vector<1x16xi32>
    %9 = arith.cmpi sgt, %7, %8 : vector<1x16xi32>
    %cst = arith.constant 0.000000e+00 : f32
    %10 = vector.shape_cast %9 : vector<1x16xi1> to vector<1x16xi1>
    %11 = vector.broadcast %10 : vector<1x16xi1> to vector<64x16xi1>
    %12 = vector.broadcast %cst : f32 to vector<64x16xf32>
    %13 = arith.select %11, %6, %12 : vector<64x16xi1>, vector<64x16xf32>
    %cst_2 = arith.constant dense<0.000000e+00> : vector<64xf32>
    %14 = vector.multi_reduction <add>, %13, %cst_2 [1] : vector<64x16xf32> to vector<64xf32>
    %15 = vector.shape_cast %14 : vector<64xf32> to vector<64x1xf32>
    %cst_3 = arith.constant dense<0.000000e+00> : vector<64xf32>
    %16 = vector.multi_reduction <add>, %3, %cst_3 [1] : vector<64x16xf32> to vector<64xf32>
    %17 = vector.shape_cast %16 : vector<64xf32> to vector<64x1xf32>
    %18 = tpu.iota {dimensions = array<i32: 0>} : vector<64x1xi32>
    %c16_i32 = arith.constant 16 : i32
    %c0_i32_4 = arith.constant 0 : i32
    %19 = arith.cmpi eq, %c16_i32, %c0_i32_4 : i32
    %c1_i32_5 = arith.constant 1 : i32
    %20 = arith.select %19, %c1_i32_5, %c16_i32 : i32
    %21 = vector.broadcast %20 : i32 to vector<64x1xi32>
    %22 = arith.remsi %18, %21 : vector<64x1xi32>
    %c0_i32_6 = arith.constant 0 : i32
    %23 = vector.broadcast %c0_i32_6 : i32 to vector<64x1xi32>
    %24 = arith.cmpi ne, %22, %23 : vector<64x1xi32>
    %c0_i32_7 = arith.constant 0 : i32
    %25 = vector.broadcast %c0_i32_7 : i32 to vector<64x1xi32>
    %26 = arith.cmpi slt, %22, %25 : vector<64x1xi32>
    %c0_i32_8 = arith.constant 0 : i32
    %27 = arith.cmpi slt, %20, %c0_i32_8 : i32
    %28 = vector.broadcast %27 : i1 to vector<64x1xi1>
    %29 = vector.broadcast %28 : vector<64x1xi1> to vector<64x1xi1>
    %30 = arith.xori %26, %29 : vector<64x1xi1>
    %31 = arith.andi %30, %24 : vector<64x1xi1>
    %32 = vector.broadcast %20 : i32 to vector<64x1xi32>
    %33 = arith.addi %22, %32 : vector<64x1xi32>
    %34 = arith.select %31, %33, %22 : vector<64x1xi1>, vector<64x1xi32>
    %c0_i32_9 = arith.constant 0 : i32
    %35 = vector.broadcast %c0_i32_9 : i32 to vector<64x1xi32>
    %36 = arith.cmpi ne, %34, %35 : vector<64x1xi32>
    %cst_10 = arith.constant 0.000000e+00 : f32
    %37 = vector.broadcast %cst_10 : f32 to vector<64x1xf32>
    %38 = arith.select %36, %17, %37 : vector<64x1xi1>, vector<64x1xf32>
    %39 = arith.addf %38, %15 : vector<64x1xf32>
    %40 = vector.shape_cast %39 : vector<64x1xf32> to vector<1x64x1xf32>
    %cst_11 = arith.constant dense<0.000000e+00> : vector<1xf32>
    %41 = vector.multi_reduction <add>, %40, %cst_11 [1, 2] : vector<1x64x1xf32> to vector<1xf32>
    %42 = vector.shape_cast %41 : vector<1xf32> to vector<1x1x1xf32>
    %43 = vector.extract %42[0, 0, 0] : f32 from vector<1x1x1xf32>
    %44 = vector.broadcast %43 : f32 to vector<1x8x128xf32>
    %c0_12 = arith.constant 0 : index
    %c0_13 = arith.constant 0 : index
    %c0_14 = arith.constant 0 : index
    %45 = vector.load %arg2[%c0_12, %c0_13, %c0_14] : memref<1x8x128xf32, #tpu.memory_space<vmem>>, vector<1x8x128xf32>
    tpu.vector_store %arg2[%c0_12, %c0_13, %c0_14], %44 {strides = array<i32>} : memref<1x8x128xf32, #tpu.memory_space<vmem>>, vector<1x8x128xf32>,
    return
  }
  func.func @transform_0(%arg0: i32) -> (i32, i32) {
    %c0_i32 = arith.constant 0 : i32
    %c0_i32_0 = arith.constant 0 : i32
    return %arg0, %c0_i32 : i32, i32
  }
  func.func @transform_1(%arg0: i32) -> (i32, i32, i32) {
    %c0_i32 = arith.constant 0 : i32
    %c0_i32_0 = arith.constant 0 : i32
    %c0_i32_1 = arith.constant 0 : i32
    return %arg0, %c0_i32, %c0_i32_0 : i32, i32, i32
  }
}

</mosaic_0001>

<bundles_post_ra>
// kernel: tpu_custom_call.1
= control target key start
LH: loop header
LB: loop body
LE: loop exit
PB: predicated region body
PF: predicated region fallthrough
CT: control target
= control target key end

     0   :  { %6 = vsyncpa [#allocation3], 0  ;;  %s928_s0 = inlined_call_operand.vmem [shape: f32[128,16], index: 0, kind: input, shape index: {}]   ;;  %s929_s1 = inlined_call_operand.hbm [shape: f32[2,8,128], index: 1, kind: output, shape index: {}]  }
   0x1   :  { %8 = vsyncpa [#allocation3 + $0x1], 0  ;;  %s675_s6 = smov 0   ;;  %s677_s7 = smov 0  }
   0x2   :  { %s679_s8 = smov 0   ;;  %s681_s9 = smov 0  }
   0x3 LB: > { %s696_s10 = sadd.s32 4294967295, %s660_s9   ;;  %s546_s11 = sadd.s32 4294967294, %s660_s9   ;;  %s660_s9 = sphi %s681_s9, %s937_s9   ;;  %s656_s8 = sphi %s679_s8, %s936_s8   ;;  %s652_s7 = sphi %s677_s7, %s935_s7   ;;  %s648_s6 = sphi %s675_s6, %s934_s6  }
   0x4   : > { %s700_s12 = sadd.s32 1, %s660_s9   ;;  %s47_s13 = sadd.s32 1, %s656_s8 }
   0x5   : > { %s44_s14 = ssub.s32 %s660_s9, %s700_s12  ;;  %p57_p0 = scmp.ne.s32.totalorder %s656_s8, %s652_s7 }
   0x6   : > { %p45_p1 = scmp.eq.s32.totalorder %s44_s14, 0  ;;  %p58_p2 = scmp.eq.s32.totalorder %s696_s10, 1 }
   0x7   : > { %p63_p3 = scmp.ne.s32.totalorder %s652_s7, %s648_s6  ;;  %p64_p4 = scmp.eq.s32.totalorder %s546_s11, 1 }
   0x8   : > { %s711_s15 = scalar_select %p45_p1, %s656_s8, %s47_s13  }
   0x9   : > { %p713_p5 = por %p58_p2, %p57_p0  ;;  %p717_p6 = por %p64_p4, %p63_p3 }
   0xa   : > { %p549_p7 = scmp.ge.s32.totalorder %s660_s9, 1  ;;  %p91_p8 = scmp.lt.s32.totalorder %s660_s9, 3 }
   0xc   : > { %p92_p9 = pnand %p549_p7, %p91_p8 }
   0xd   : > { %s551_s18 = sshll.u32 (!%p92_p9), %s696_s10, 3  ;;  %s662_s23 = smov (!%p92_p9), 16  }
   0xe   : > { %95 = sbr.rel (%p92_p9) target bundleno = 753 (0x2f1), region = 24  ;;  %p112_p10 = scmp.lt.s32.totalorder (!%p92_p9), %s551_s18, 15 }
   0xf   : > { %s663_s24 = smov (!%p92_p9), 113   ;;  %s108_s25 = sand.u32 (!%p92_p9), 1, %s652_s7  }
  0x10   : > { %s550_s26 = sshll.u32 (!%p92_p9), %s108_s25, 3  ;;  %s554_s29 = sshll.u32 (!%p92_p9), %s696_s10, 7 }
  0x11   : > { %s110_s27 = scalar_lea.vmem (!%p92_p9), [#allocation2], %s550_s26  ;;  %s485_s4 = scalar_lea.hbm (!%p92_p9), %s929_s1, %s554_s29 }
  0x12   : > { %s487_s28 = sshll.u32 (!%p92_p9), %s110_s27, 4  ;;  %s474_s5 = scalar_lea.sflag (!%p92_p9), [#allocation3], %s108_s25  ;;  %s890_s28 = int_to_ptr.vmem [resolvable:$true] %s487_s28 }
  0x13   : > { %s939_s18 = smov (!%p112_p10, %s551_s18), 15  ;;  %vm160_vm0 = vcmask 1047680   ;;  %v133_v40 = vlaneseq  ;;  %vm270_vm2 = vcmask 130048   ;;  %vm446_vm6 = vcmask 7168   ;;  %s600_s11 = scalar_lea.vmem %s890_s28, 128 }
  0x14   : > { %s552_s19 = sshll.u32 %s939_s18, 3  ;;  %p601_p11 = scmp.ne.s32.totalorder %s890_s28, %s600_s11 }
  0x15   : > { %s115_s22 = scalar_lea.vmem %s928_s0, %s552_s19  ;;  %v799_v41 = vshrl.u32 %v133_v40, 7  ;;  %s664_s13 = smov [#allocation2]  }
  0x16   : > { %v727_v0 = vld [vmem:[%s115_s22] sm:$0xff]  ;;  %v729_v1 = vld [vmem:[%s115_s22 + $0x10] sm:$0xff]  ;;  %v735_v2 = vld [vmem:[%s115_s22 + $0x8] sm:$0xff]  ;;  %p602_p12 = pnand %p601_p11, %p713_p5  ;;  %s604_s10 = sshll.u32 %s664_s13, 4  ;;  %s605_s10 = int_to_ptr.vmem [resolvable:$false] %s604_s10 }
  0x17   : > { %161 = vrot.lane.b32.xlu0 %v727_v0, %s662_s23  ;;  %167 = vrot.lane.b32.xlu1 %v729_v1, %s662_s23  ;;  %v737_v3 = vld [vmem:[%s115_s22 + $0x18] sm:$0xff]  ;;  %v743_v4 = vld [vmem:[%s115_s22 + $0x28] sm:$0xff]  ;;  %v125_v42 = vrot.slane %v727_v0, 7  ;;  %vm135_vm1 = vcmp.lt.s32.totalorder %v799_v41, 1  ;;  %v126_v45 = vrot.slane %v735_v2, 7  ;;  %v127_v48 = vrot.slane %v729_v1, 7  ;;  %p607_p0 = scmp.lt.s32.totalorder %s890_s28, %s605_s10 }
  0x18   : > { %v745_v5 = vld [vmem:[%s115_s22 + $0x20] sm:$0xff]  ;;  %v751_v6 = vld [vmem:[%s115_s22 + $0x30] sm:$0xff]  ;;  %v753_v7 = vld [vmem:[%s115_s22 + $0x38] sm:$0xff]  ;;  %v128_v49 = vrot.slane %v737_v3, 7  ;;  %v130_v55 = vrot.slane %v743_v4, 7  ;;  %p603_p13 = pneg %p602_p12  ;;  %s606_s14 = scalar_lea.vmem %s605_s10, 256 }
  0x19   : > { %v132_v43 = vrot.slane %v753_v7, 7  ;;  %v142_v47 = vsel %vm135_vm1, %v125_v42, %v126_v45  ;;  %v141_v53 = vsel %vm135_vm1, %v126_v45, %v127_v48  ;;  %v129_v54 = vrot.slane %v745_v5, 7  ;;  %p608_p1 = scmp.lt.s32.totalorder %s606_s14, %s600_s11 }
  0x1a   : > { %v145_v51 = vsub.f32 %v735_v2, %v142_v47  ;;  %v140_v52 = vsel %vm135_vm1, %v127_v48, %v128_v49  ;;  %v146_v59 = vsub.f32 %v729_v1, %v141_v53  ;;  %v131_v62 = vrot.slane %v751_v6, 7 }
  0x1b   : > { %164 = vrot.lane.b32.xlu0 %v735_v2, %s662_s23  ;;  %170 = vrot.lane.b32.xlu1 %v737_v3, %s662_s23  ;;  %v143_v44 = vsel %vm135_vm1, %v132_v43, %v125_v42  ;;  %v147_v58 = vsub.f32 %v737_v3, %v140_v52  ;;  %v138_v60 = vsel %vm135_vm1, %v129_v54, %v130_v55  ;;  %p609_p2 = por %p608_p1, %p607_p0 }
  0x1c   : > { %v144_v46 = vsub.f32 %v727_v0, %v143_v44  ;;  %v153_v57 = vand.u32 2147483647, %v145_v51  ;;  %v139_v61 = vsel %vm135_vm1, %v128_v49, %v129_v54 }
  0x1d   : > { %p610_p3 = pnand %p609_p2, %p603_p13 }
  0x1e   : > { %v152_v50 = vand.u32 2147483647, %v144_v46  ;;  %v298_v63 = vsel %vm270_vm2, %v153_v57, 0.0 }
  0x1f   : > { %176 = vrot.lane.b32.xlu1 %v743_v4, %s662_s23  ;;  %173 = vrot.lane.b32.xlu0 %v745_v5, %s662_s23 }
  0x20   : > { %v295_v56 = vsel %vm270_vm2, %v152_v50, 0.0 }
  0x23   : > { %179 = vrot.lane.b32.xlu0 %v751_v6, %s662_s23  ;;  %182 = vrot.lane.b32.xlu1 %v753_v7, %s662_s23 }
  0x89   : > { %v162_v8 = vpop.permute.xlu0 %161  ;;  %v168_v9 = vpop.permute.xlu1 %167 }
  0x8a   : > { %v163_v10 = vsel %vm160_vm0, %v162_v8, %v727_v0  ;;  %v169_v11 = vsel %vm160_vm0, %v168_v9, %v729_v1  ;;  %v155_v8 = vand.u32 2147483647, %v147_v58  ;;  %v149_v9 = vsub.f32 %v743_v4, %v138_v60 }
  0x8b   : > { %185 = vrot.lane.b32.xlu0 %v163_v10, %s662_s23  ;;  %v154_v10 = vand.u32 2147483647, %v146_v59 }
  0x8d   : > { %v165_v12 = vpop.permute.xlu0 %164  ;;  %v171_v13 = vpop.permute.xlu1 %170 }
  0x8e   : > { %v166_v14 = vsel %vm160_vm0, %v165_v12, %v735_v2  ;;  %v172_v15 = vsel %vm160_vm0, %v171_v13, %v737_v3  ;;  %v137_v12 = vsel %vm135_vm1, %v130_v55, %v131_v62  ;;  %v304_v13 = vsel %vm270_vm2, %v155_v8, 0.0 }
  0x8f   : > { %187 = vrot.lane.b32.xlu1 %v166_v14, %s662_s23  ;;  %189 = vrot.lane.b32.xlu0 %v169_v11, %s662_s23  ;;  %v148_v11 = vsub.f32 %v745_v5, %v139_v61  ;;  %v157_v14 = vand.u32 2147483647, %v149_v9 }
  0x91   : > { %v177_v16 = vpop.permute.xlu1 %176  ;;  %v174_v17 = vpop.permute.xlu0 %173 }
  0x92   : > { %v175_v18 = vsel %vm160_vm0, %v174_v17, %v745_v5  ;;  %v178_v19 = vsel %vm160_vm0, %v177_v16, %v743_v4  ;;  %v156_v16 = vand.u32 2147483647, %v148_v11  ;;  %v150_v17 = vsub.f32 %v751_v6, %v137_v12 }
  0x93   : > { %191 = vrot.lane.b32.xlu1 %v172_v15, %s662_s23  ;;  %193 = vrot.lane.b32.xlu0 %v175_v18, %s662_s23  ;;  %v301_v15 = vsel %vm270_vm2, %v154_v10, 0.0  ;;  %v310_v18 = vsel %vm270_vm2, %v157_v14, 0.0  ;;  %v320_v10 = vadd.s32 16, %v799_v41  ;;  %v330_v11 = vand.u32 15, %v799_v41 }
  0x95   : > { %v180_v20 = vpop.permute.xlu0 %179  ;;  %v183_v21 = vpop.permute.xlu1 %182  ;;  %v344_v14 = vand.u32 15, %v320_v10  ;;  %vm422_vm4 = vcmp.ne.s32.totalorder %v330_v11, 0 }
  0x96   : > { %v181_v22 = vsel %vm160_vm0, %v180_v20, %v751_v6  ;;  %v184_v23 = vsel %vm160_vm0, %v183_v21, %v753_v7  ;;  %v158_v20 = vand.u32 2147483647, %v150_v17 }
  0x97   : > { %195 = vrot.lane.b32.xlu1 %v178_v19, %s662_s23  ;;  %197 = vrot.lane.b32.xlu0 %v181_v22, %s662_s23  ;;  %v307_v19 = vsel %vm270_vm2, %v156_v16, 0.0  ;;  %v258_v22 = vand.u32 127, %v133_v40  ;;  %vm424_vm5 = vcmp.ne.s32.totalorder %v344_v14, 0 }
  0x98   : > { %v313_v21 = vsel %vm270_vm2, %v158_v20, 0.0 }
  0x99   : > { %vm259_vm3 = vcmp.gt.s32.totalorder %v258_v22, 0 }
  0x9b   : > { %199 = vrot.lane.b32.xlu1 %v184_v23, %s662_s23 }
  0xfd   : > { %v186_v24 = vpop.permute.xlu0 %185 }
  0xfe   : > { %v201_v25 = vsel %vm160_vm0, %v186_v24, %v727_v0 }
  0xff   : > { %217 = vrot.lane.b32.xlu0 %v201_v25, %s663_s24 }
 0x101   : > { %v188_v26 = vpop.permute.xlu1 %187  ;;  %v190_v27 = vpop.permute.xlu0 %189 }
 0x102   : > { %v202_v28 = vsel %vm160_vm0, %v188_v26, %v735_v2  ;;  %v203_v29 = vsel %vm160_vm0, %v190_v27, %v729_v1 }
 0x103   : > { %219 = vrot.lane.b32.xlu1 %v202_v28, %s663_s24  ;;  %221 = vrot.lane.b32.xlu0 %v203_v29, %s663_s24 }
 0x105   : > { %v192_v30 = vpop.permute.xlu1 %191  ;;  %v194_v31 = vpop.permute.xlu0 %193 }
 0x106   : > { %v204_v32 = vsel %vm160_vm0, %v192_v30, %v737_v3  ;;  %v205_v33 = vsel %vm160_vm0, %v194_v31, %v745_v5 }
 0x107   : > { %223 = vrot.lane.b32.xlu1 %v204_v32, %s663_s24  ;;  %225 = vrot.lane.b32.xlu0 %v205_v33, %s663_s24 }
 0x109   : > { %v196_v34 = vpop.permute.xlu1 %195  ;;  %v198_v35 = vpop.permute.xlu0 %197 }
 0x10a   : > { %v206_v36 = vsel %vm160_vm0, %v196_v34, %v743_v4  ;;  %v207_v37 = vsel %vm160_vm0, %v198_v35, %v751_v6 }
 0x10b   : > { %227 = vrot.lane.b32.xlu1 %v206_v36, %s663_s24  ;;  %229 = vrot.lane.b32.xlu0 %v207_v37, %s663_s24 }
 0x10d   : > { %v200_v38 = vpop.permute.xlu1 %199 }
 0x10e   : > { %v208_v39 = vsel %vm160_vm0, %v200_v38, %v753_v7 }
 0x10f   : > { %231 = vrot.lane.b32.xlu1 %v208_v39, %s663_s24 }
 0x12a   : > { %296 = vadd.xlane.f32.xlu0 %v295_v56 }
 0x12e   : > { %299 = vadd.xlane.f32.xlu0 %v298_v63 }
 0x132   : > { %305 = vadd.xlane.f32.xlu0 %v304_v13  ;;  %v322_v13 = vadd.s32 32, %v799_v41 }
 0x133   : > { %302 = vadd.xlane.f32.xlu1 %v301_v15 }
 0x134   : > { %v358_v17 = vand.u32 15, %v322_v13 }
 0x136   : > { %311 = vadd.xlane.f32.xlu0 %v310_v18  ;;  %vm875_vm7 = vcmp.ne.s32.totalorder %v358_v17, 0 }
 0x137   : > { %308 = vadd.xlane.f32.xlu1 %v307_v19  ;;  %v324_v19 = vadd.s32 48, %v799_v41 }
 0x13b   : > { %314 = vadd.xlane.f32.xlu1 %v313_v21 }
 0x171   : > { %v218_v23 = vpop.permute.xlu0 %217 }
 0x172   : > { %v241_v24 = vsub.f32 %v727_v0, %v218_v23 }
 0x174   : > { %v249_v25 = vand.u32 2147483647, %v241_v24 }
 0x175   : > { %v220_v26 = vpop.permute.xlu1 %219  ;;  %v222_v27 = vpop.permute.xlu0 %221 }
 0x176   : > { %v242_v28 = vsub.f32 %v735_v2, %v220_v26  ;;  %v262_v29 = vsel %vm259_vm3, %v249_v25, 0.0  ;;  %v243_v30 = vsub.f32 %v729_v1, %v222_v27  ;;  %v372_v27 = vand.u32 15, %v324_v19 }
 0x177   : > { %v271_v31 = vsel %vm270_vm2, %v262_v29, 0.0 }
 0x178   : > { %v250_v32 = vand.u32 2147483647, %v242_v28  ;;  %272 = vadd.xlane.f32.xlu1 %v271_v31  ;;  %v251_v33 = vand.u32 2147483647, %v243_v30  ;;  %vm428_vm8 = vcmp.ne.s32.totalorder %v372_v27, 0 }
 0x179   : > { %v224_v34 = vpop.permute.xlu1 %223  ;;  %v226_v35 = vpop.permute.xlu0 %225 }
 0x17a   : > { %v244_v36 = vsub.f32 %v737_v3, %v224_v34  ;;  %v263_v0 = vsel %vm259_vm3, %v250_v32, 0.0  ;;  %v245_v37 = vsub.f32 %v745_v5, %v226_v35  ;;  %v264_v38 = vsel %vm259_vm3, %v251_v33, 0.0 }
 0x17b   : > { %v274_v2 = vsel %vm270_vm2, %v263_v0, 0.0  ;;  %v277_v42 = vsel %vm270_vm2, %v264_v38, 0.0  ;;  %v136_v3 = vsel %vm135_vm1, %v131_v62, %v132_v43 }
 0x17c   : > { %v252_v39 = vand.u32 2147483647, %v244_v36  ;;  %275 = vadd.xlane.f32.xlu0 %v274_v2  ;;  %v253_v1 = vand.u32 2147483647, %v245_v37  ;;  %v151_v53 = vsub.f32 %v753_v7, %v136_v3 }
 0x17d   : > { %v228_v40 = vpop.permute.xlu1 %227  ;;  %v230_v44 = vpop.permute.xlu0 %229 }
 0x17e   : > { %v246_v45 = vsub.f32 %v743_v4, %v228_v40  ;;  %v265_v5 = vsel %vm259_vm3, %v252_v39, 0.0  ;;  %v247_v46 = vsub.f32 %v751_v6, %v230_v44  ;;  %v266_v47 = vsel %vm259_vm3, %v253_v1, 0.0 }
 0x17f   : > { %v280_v48 = vsel %vm270_vm2, %v265_v5, 0.0  ;;  %v283_v51 = vsel %vm270_vm2, %v266_v47, 0.0  ;;  %v159_v57 = vand.u32 2147483647, %v151_v53 }
 0x180   : > { %v254_v49 = vand.u32 2147483647, %v246_v45  ;;  %281 = vadd.xlane.f32.xlu1 %v280_v48  ;;  %278 = vadd.xlane.f32.xlu0 %v277_v42  ;;  %v255_v50 = vand.u32 2147483647, %v247_v46 }
 0x181   : > { %v232_v52 = vpop.permute.xlu1 %231  ;;  %v316_v60 = vsel %vm270_vm2, %v159_v57, 0.0 }
 0x182   : > { %v267_v43 = vsel %vm259_vm3, %v254_v49, 0.0  ;;  %v248_v4 = vsub.f32 %v753_v7, %v232_v52  ;;  %v268_v54 = vsel %vm259_vm3, %v255_v50, 0.0 }
 0x183   : > { %v286_v6 = vsel %vm270_vm2, %v267_v43, 0.0  ;;  %v289_v56 = vsel %vm270_vm2, %v268_v54, 0.0 }
 0x184   : > { %287 = vadd.xlane.f32.xlu1 %v286_v6  ;;  %284 = vadd.xlane.f32.xlu0 %v283_v51  ;;  %v256_v55 = vand.u32 2147483647, %v248_v4 }
 0x186   : > { %v269_v58 = vsel %vm259_vm3, %v256_v55, 0.0 }
 0x187   : > { %v292_v59 = vsel %vm270_vm2, %v269_v58, 0.0 }
 0x188   : > { %290 = vadd.xlane.f32.xlu0 %v289_v56  ;;  %293 = vadd.xlane.f32.xlu1 %v292_v59 }
 0x18c   : > { %317 = vadd.xlane.f32.xlu0 %v316_v60 }
 0x1b3   : > { %v297_v7 = vpop.xlane.xlu0 %296 }
 0x1b4   : > { %v430_v16 = vsel %vm422_vm4, %v297_v7, 0.0 }
 0x1b7   : > { %v300_v62 = vpop.xlane.xlu0 %299 }
 0x1bb   : > { %v306_v8 = vpop.xlane.xlu0 %305 }
 0x1bc   : > { %v303_v61 = vpop.xlane.xlu1 %302 }
 0x1bd   : > { %v432_v23 = vsel %vm424_vm5, %v303_v61, 0.0 }
 0x1bf   : > { %v312_v12 = vpop.xlane.xlu0 %311 }
 0x1c0   : > { %v309_v63 = vpop.xlane.xlu1 %308 }
 0x1c1   : > { %v434_v32 = vsel %vm875_vm7, %v309_v63, 0.0 }
 0x1c4   : > { %v315_v9 = vpop.xlane.xlu1 %314 }
 0x1c5   : > { %v436_v39 = vsel %vm428_vm8, %v315_v9, 0.0 }
 0x201   : > { %v273_v15 = vpop.xlane.xlu1 %272 }
 0x202   : > { %v438_v20 = vadd.f32 %v430_v16, %v273_v15 }
 0x204   : > { %v447_v28 = vsel %vm446_vm6, %v438_v20, 0.0 }
 0x205   : > { %v276_v18 = vpop.xlane.xlu0 %275 }
 0x206   : > { %v439_v21 = vadd.f32 %v300_v62, %v276_v18 }
 0x208   : > { %v448_v22 = vsel %vm446_vm6, %v439_v21, 0.0 }
 0x209   : > { %v282_v25 = vpop.xlane.xlu1 %281  ;;  %v279_v26 = vpop.xlane.xlu0 %278  ;;  %v449_v31 = vadd.f32 %v448_v22, %v447_v28 }
 0x20a   : > { %v441_v29 = vadd.f32 %v306_v8, %v282_v25  ;;  %v440_v30 = vadd.f32 %v432_v23, %v279_v26 }
 0x20c   : > { %v450_v41 = vsel %vm446_vm6, %v440_v30, 0.0  ;;  %v452_v36 = vsel %vm446_vm6, %v441_v29, 0.0 }
 0x20d   : > { %v451_v33 = vadd.f32 %v450_v41, %v449_v31  ;;  %v288_v34 = vpop.xlane.xlu1 %287  ;;  %v285_v35 = vpop.xlane.xlu0 %284 }
 0x20e   : > { %v443_v0 = vadd.f32 %v312_v12, %v288_v34  ;;  %v442_v37 = vadd.f32 %v434_v32, %v285_v35 }
 0x20f   : > { %v453_v38 = vadd.f32 %v452_v36, %v451_v33 }
 0x210   : > { %v454_v2 = vsel %vm446_vm6, %v442_v37, 0.0  ;;  %v456_v42 = vsel %vm446_vm6, %v443_v0, 0.0 }
 0x211   : > { %v455_v1 = vadd.f32 %v454_v2, %v453_v38  ;;  %v291_v40 = vpop.xlane.xlu0 %290  ;;  %v294_v3 = vpop.xlane.xlu1 %293 }
 0x212   : > { %v444_v44 = vadd.f32 %v436_v39, %v291_v40 }
 0x213   : > { %v457_v45 = vadd.f32 %v456_v42, %v455_v1 }
 0x214   : > { %v458_v5 = vsel %vm446_vm6, %v444_v44, 0.0 }
 0x215   : > { %v318_v46 = vpop.xlane.xlu0 %317  ;;  %v459_v48 = vadd.f32 %v458_v5, %v457_v45 }
 0x216   : > { %v445_v47 = vadd.f32 %v318_v46, %v294_v3 }
 0x218   : > { %v460_v49 = vsel %vm446_vm6, %v445_v47, 0.0 }
 0x219   : > { %v461_v50 = vadd.f32 %v460_v49, %v459_v48 }
 0x21b   : > { %462 = vadd.xlane.f32.xlu1 %v461_v50 }
 0x2a4   : > { %v463_v51 = vpop.xlane.xlu1 %462 }
 0x2a5   : > { %v464_v52 = vrot.slane %v463_v51, 4 }
 0x2a7   : > { %v465_v53 = vadd.f32 %v464_v52, %v463_v51 }
 0x2a9   : > { %v466_v43 = vrot.slane %v465_v53, 2 }
 0x2ab   : > { %v467_v4 = vadd.f32 %v466_v43, %v465_v53 }
 0x2ad   : > { %v468_v54 = vrot.slane %v467_v4, 1 }
 0x2af   : > { %v469_v6 = vadd.f32 %v468_v54, %v467_v4 }
 0x2b1   : > { %557 = vpush %v469_v6 }
 0x2e2   : > { %s558_s30 = spop %557 }
 0x2e3   : > { %v471_v55 = vstv %s558_s30 }
 0x2e4   : > { %472 = vst [vmem:[%s110_s27] sm:$0xff] %v471_v55 }
 0x2e5   : > { %613 = shalt.err (!%p610_p3)
}
 0x2e6   : > { %s614_s18 = scalar_lea.hbm %s485_s4, 128  ;;  %s618_s21 = scalar_lea.hbm %s929_s1, 256 }
 0x2e7   : > { %p615_p4 = scmp.ne.s32.totalorder %s485_s4, %s614_s18  ;;  %p619_p9 = scmp.lt.s32.totalorder %s485_s4, %s929_s1 }
 0x2e8   : > { %p620_p10 = scmp.lt.s32.totalorder %s618_s21, %s614_s18 }
 0x2e9   : > { %p616_p7 = pnand %p615_p4, %p713_p5 }
 0x2ea   : > { %p621_p11 = por %p620_p10, %p619_p9 }
 0x2eb   : > { %p617_p8 = pneg %p616_p7 }
 0x2ed   : > { %p622_p12 = pnand %p621_p11, %p617_p8 }
 0x2ef   : > { %625 = shalt.err (!%p622_p12)
}
 0x2f0   : > { %559 = dma.vmem_to_hbm [thread:$0]  (%p713_p5), %s890_s28, 128, %s485_s4, %s474_s5  }
 0x2f1 PF: > { %p565_p13 = scmp.ge.s32.totalorder %s660_s9, 2  ;;  %s499_s24 = sand.u32 1, %s648_s6  }
 0x2f2   : > { %s500_s25 = scalar_lea.sflag [#allocation3], %s499_s24 }
 0x2f3   : > { %p562_p0 = pnand %p565_p13, %p717_p6 }
 0x2f5   : > { %p563_p1 = pneg %p562_p0 }
 0x2f7   : > { %643 = dma.done.wait (%p563_p1), %s500_s25, 128  }
 0x2f8   : > { %645 = vsyncadd (%p563_p1), %s500_s25, 4294967168  ;;  %p11_p2 = scmp.ge.s32.totalorder %s700_s12, 4   ;;  %s934_s6 = smov %s652_s7 }
 0x2f9   : > { %s935_s7 = smov %s656_s8  ;;  %s936_s8 = smov %s711_s15 }
 0x2fa   : > { %s937_s9 = smov %s700_s12  ;;  %13 = sbr.rel (!%p11_p2) target bundleno = 3 (0x3), region = 59 }
 0x2ff   :  { %505 = vsyncpa [#allocation3], 1 }
 0x300   :  { %507 = vsyncpa [#allocation3 + $0x1], 1 }

</bundles_post_ra>
